<compile_context>
chip_gen: v5e
topology: v5e:2x2
jax: 0.10.0
libtpu: 0.0.40
codegen_flags: <defaults>
</compile_context>

<pallas_src>
import jax
import jax.numpy as jnp
from jax.experimental import pallas as pl
from jax.experimental.pallas import tpu as pltpu

# ---- problem sizes (small, consistent with an image-classifier forward) ----
B = 2            # batch
CIN = 3          # RGB input channels
H = W = 16       # spatial
K = 3            # conv kernel size (padding=1, stride=1 -> same spatial)
COUT = 16        # backbone feature channels
NUM_CLASSES = 5  # EnhancedDRClassifier(num_classes=5)

HW = H * W
HP = H + 2                 # padded height
S = (W + 2) * CIN          # flattened (padded width, channel) lane axis = 54
S1 = S + 1                 # + constant-one lane carrying the folded conv bias
NW = W * COUT              # conv-output lane axis: j*COUT + co = 256
NCPAD = 128                # lane-dense (padded) classifier output width
OUT_ROWS = 8               # sublane-dense output slab (>= B)


def _drc_kernel(xt_ref, wb_ref, rsel_ref, wsum_ref, bfc_ref, out_ref):
    """Whole batch in a single, gridless kernel invocation.

    xt_ref   : [K, B*H, S1]      bf16  pre-staged row taps (+ ones lane)
    wb_ref   : [K, S1, W*COUT]   bf16  banded conv weights (+ bias row on tap 0)
    rsel_ref : [OUT_ROWS, B*H]   bf16  per-batch H-sum selector (rows >= B are 0)
    wsum_ref : [W*COUT, NCPAD]   bf16  folds GAP-over-j, 1/(H*W) and the FC
    bfc_ref  : [1, NCPAD]        f32   classifier bias (lane padded)
    out_ref  : [OUT_ROWS, NCPAD] f32   lane- and sublane-dense logits slab
    """
    # Conv3x3 (+ folded bias) as K accumulated MXU matmuls over all B*H rows:
    # column taps and input channels live inside the banded weights, so the
    # whole patch contraction runs on the MXU with bf16 inputs / f32 accum.
    acc = jnp.dot(xt_ref[0], wb_ref[0], preferred_element_type=jnp.float32)
    for di in range(1, K):                                    # static, K = 3
        acc = acc + jnp.dot(xt_ref[di], wb_ref[di],
                            preferred_element_type=jnp.float32)
    y = jnp.maximum(acc, 0.0).astype(jnp.bfloat16)            # [B*H, NW]

    # Commuted H-reduction: selector matmul sums the H rows of each batch
    # element and pads the batch dim to OUT_ROWS in one go.
    ysum = jnp.dot(rsel_ref[...], y,
                   preferred_element_type=jnp.float32)        # [OUT_ROWS, NW]

    # GAP-over-width + 1/(H*W) + classifier FC folded into one matmul.
    logits = jnp.dot(ysum.astype(jnp.bfloat16), wsum_ref[...],
                     preferred_element_type=jnp.float32)      # [OUT_ROWS, 128]
    out_ref[...] = logits + bfc_ref[...]                      # dense [8,128] store


def prepare_params(w_conv, b_conv, w_fc, b_fc):
    """One-time weight transform, run at model load (NOT in the serving path).

    wb[di, wp*CIN + c, j*COUT + co] = w_conv[di, wp - j, c, co] if 0 <= wp-j < K
    plus a bias row (index S) on tap 0 only, so that
        sum_di  xt[di] @ wb[di]  ==  Conv3x3(x) + b_conv   (pre-ReLU).
    """
    s = jnp.arange(S)
    wp = s // CIN
    c = s % CIN
    j = jnp.arange(W)
    dj = wp[:, None] - j[None, :]                         # [S, W]
    valid = (dj >= 0) & (dj < K)
    djc = jnp.clip(dj, 0, K - 1)
    wg = w_conv[:, djc, c[:, None], :]                    # [K, S, W, COUT]
    wb = jnp.where(valid[None, :, :, None], wg, 0.0).reshape(K, S, NW)
    # Folded conv bias: full bias on tap 0's extra row, zeros on taps 1..K-1,
    # so the ones-lane contributes it exactly once.
    brow0 = jnp.tile(b_conv, W)[None, None, :]            # [1, 1, NW]
    brow = jnp.concatenate(
        [brow0, jnp.zeros((K - 1, 1, NW), wb.dtype)], axis=0)   # [K, 1, NW]
    wb = jnp.concatenate([wb, brow], axis=1).astype(jnp.bfloat16)  # [K, S1, NW]

    # Per-batch H-sum selector (also pads the batch dim to OUT_ROWS).
    r = jnp.arange(OUT_ROWS)[:, None]
    i = jnp.arange(B * H)[None, :]
    rsel = ((i // H) == r).astype(jnp.bfloat16)            # [OUT_ROWS, B*H]

    # GAP-over-j + 1/(H*W) + FC folded into one [W*COUT, NCPAD] bf16 matrix.
    wsum = jnp.tile(w_fc / float(HW), (W, 1))              # [NW, NC]
    wsum = jnp.pad(wsum, ((0, 0), (0, NCPAD - NUM_CLASSES))).astype(jnp.bfloat16)
    bfc_pad = jnp.pad(b_fc, (0, NCPAD - NUM_CLASSES))[None, :].astype(jnp.float32)
    return wb, rsel, wsum, bfc_pad


@jax.jit
def inference_model_forward(x_nchw, wb, rsel, wsum, bfc_pad):
    """logits = FC(GAP(ReLU(Conv3x3(x)))) ; alpha=0 -> domain branch no-op."""
    # Layout plumbing only: NCHW -> NHWC, zero-pad the border, pre-stage the
    # K row taps (aligned loads in-kernel), append the constant-one bias lane,
    # cast to bf16.  No 9x im2col expansion through HBM (~10 KB total).
    x_nhwc = jnp.transpose(x_nchw, (0, 2, 3, 1))
    xp = jnp.pad(x_nhwc, ((0, 0), (1, 1), (1, 1), (0, 0))).reshape(B, HP, S)
    taps = jnp.stack([xp[:, di:di + H] for di in range(K)], axis=0)
    taps = taps.reshape(K, B * H, S)
    ones = jnp.ones((K, B * H, 1), taps.dtype)
    xt = jnp.concatenate([taps, ones], axis=-1).astype(jnp.bfloat16)

    out = pl.pallas_call(
        _drc_kernel,
        out_shape=jax.ShapeDtypeStruct((OUT_ROWS, NCPAD), jnp.float32),
        in_specs=[pl.BlockSpec(memory_space=pltpu.MemorySpace.VMEM)] * 5,
        out_specs=pl.BlockSpec(memory_space=pltpu.MemorySpace.VMEM),
    )(xt, wb, rsel, wsum, bfc_pad)
    return out[:B, :NUM_CLASSES]


def _reference_forward(x_nchw, w_conv, b_conv, w_fc, b_fc):
    """Pure-JAX f32 reference for correctness checking."""
    x_nhwc = jnp.transpose(x_nchw, (0, 2, 3, 1))
    xp = jnp.pad(x_nhwc, ((0, 0), (1, 1), (1, 1), (0, 0)))
    y = jnp.zeros((B, H, W, COUT), jnp.float32)
    for di in range(K):
        for dj in range(K):
            y = y + jnp.einsum('bhwc,co->bhwo',
                               xp[:, di:di + H, dj:dj + W, :], w_conv[di, dj])
    y = jnp.maximum(y + b_conv, 0.0)
    feat = jnp.mean(y, axis=(1, 2))                       # [B, COUT]
    return feat @ w_fc + b_fc                             # [B, NC]


if __name__ == "__main__":
    key = jax.random.PRNGKey(0)
    kx, kwc, kbc, kwf, kbf = jax.random.split(key, 5)

    # Deterministic synthetic parameters (shapes implied by the module).
    x = jax.random.normal(kx, (B, CIN, H, W), dtype=jnp.float32)          # NCHW
    w_conv = jax.random.normal(kwc, (K, K, CIN, COUT), jnp.float32) * 0.1
    b_conv = jax.random.normal(kbc, (COUT,), jnp.float32) * 0.1
    w_fc = jax.random.normal(kwf, (COUT, NUM_CLASSES), jnp.float32) * 0.1
    b_fc = jax.random.normal(kbf, (NUM_CLASSES,), jnp.float32) * 0.1

    # Quantize the MXU-side operands to bf16-representable values so the
    # bf16-MXU kernel and the f32 reference consume identical numbers (the
    # remaining difference is the bf16 cast of the post-ReLU activations).
    x = x.astype(jnp.bfloat16).astype(jnp.float32)
    w_conv = w_conv.astype(jnp.bfloat16).astype(jnp.float32)
    b_conv = b_conv.astype(jnp.bfloat16).astype(jnp.float32)
    w_fc = w_fc.astype(jnp.bfloat16).astype(jnp.float32)

    # One-time weight prep at "model load" — hoisted out of the serving path.
    params = jax.block_until_ready(prepare_params(w_conv, b_conv, w_fc, b_fc))

    logits = inference_model_forward(x, *params)
    logits = jax.block_until_ready(logits)

    ref = _reference_forward(x, w_conv, b_conv, w_fc, b_fc)
    assert logits.shape == (B, NUM_CLASSES)
    # Tolerance covers the bf16 casts of y / ysum on the MXU path.
    assert jnp.allclose(logits, ref, atol=2e-2, rtol=2e-2), "mismatch vs reference"

    print("KERNEL_OK")
</pallas_src>

<mosaic_0001>
module attributes {stable_mosaic.version = 11 : i64} {
  func.func @_drc_kernel(%arg0: memref<3x32x55xbf16, #tpu.memory_space<vmem>>, %arg1: memref<3x55x256xbf16, #tpu.memory_space<vmem>>, %arg2: memref<8x32xbf16, #tpu.memory_space<vmem>>, %arg3: memref<256x128xbf16, #tpu.memory_space<vmem>>, %arg4: memref<1x128xf32, #tpu.memory_space<vmem>>, %arg5: memref<8x128xf32, #tpu.memory_space<vmem>>) attributes {dimension_semantics = [], scalar_prefetch = 0 : i64, scratch_operands = 0 : i64, tpu.core_type = #tpu.core_type<tc>} {
    %c0 = arith.constant 0 : index
    %c0_0 = arith.constant 0 : index
    %c0_1 = arith.constant 0 : index
    %0 = vector.load %arg0[%c0, %c0_0, %c0_1] : memref<3x32x55xbf16, #tpu.memory_space<vmem>>, vector<1x32x55xbf16>
    %1 = vector.shape_cast %0 : vector<1x32x55xbf16> to vector<32x55xbf16>
    %c0_2 = arith.constant 0 : index
    %c0_3 = arith.constant 0 : index
    %c0_4 = arith.constant 0 : index
    %2 = vector.load %arg1[%c0_2, %c0_3, %c0_4] : memref<3x55x256xbf16, #tpu.memory_space<vmem>>, vector<1x55x256xbf16>
    %3 = vector.shape_cast %2 : vector<1x55x256xbf16> to vector<55x256xbf16>
    %cst = arith.constant dense<0.000000e+00> : vector<32x256xf32>
    %4 = tpu.matmul %1, %3, %cst {dimension_numbers = #tpu.dot_dimension_numbers<[1], [0], [0], [1], [0, 0, 1, 1], [], []>} : vector<32x55xbf16>, vector<55x256xbf16>, vector<32x256xf32> -> vector<32x256xf32>
    %c1 = arith.constant 1 : index
    %c0_5 = arith.constant 0 : index
    %c0_6 = arith.constant 0 : index
    %5 = vector.load %arg0[%c1, %c0_5, %c0_6] : memref<3x32x55xbf16, #tpu.memory_space<vmem>>, vector<1x32x55xbf16>
    %6 = vector.shape_cast %5 : vector<1x32x55xbf16> to vector<32x55xbf16>
    %c1_7 = arith.constant 1 : index
    %c0_8 = arith.constant 0 : index
    %c0_9 = arith.constant 0 : index
    %7 = vector.load %arg1[%c1_7, %c0_8, %c0_9] : memref<3x55x256xbf16, #tpu.memory_space<vmem>>, vector<1x55x256xbf16>
    %8 = vector.shape_cast %7 : vector<1x55x256xbf16> to vector<55x256xbf16>
    %cst_10 = arith.constant dense<0.000000e+00> : vector<32x256xf32>
    %9 = tpu.matmul %6, %8, %cst_10 {dimension_numbers = #tpu.dot_dimension_numbers<[1], [0], [0], [1], [0, 0, 1, 1], [], []>} : vector<32x55xbf16>, vector<55x256xbf16>, vector<32x256xf32> -> vector<32x256xf32>
    %10 = arith.addf %4, %9 : vector<32x256xf32>
    %c2 = arith.constant 2 : index
    %c0_11 = arith.constant 0 : index
    %c0_12 = arith.constant 0 : index
    %11 = vector.load %arg0[%c2, %c0_11, %c0_12] : memref<3x32x55xbf16, #tpu.memory_space<vmem>>, vector<1x32x55xbf16>
    %12 = vector.shape_cast %11 : vector<1x32x55xbf16> to vector<32x55xbf16>
    %c2_13 = arith.constant 2 : index
    %c0_14 = arith.constant 0 : index
    %c0_15 = arith.constant 0 : index
    %13 = vector.load %arg1[%c2_13, %c0_14, %c0_15] : memref<3x55x256xbf16, #tpu.memory_space<vmem>>, vector<1x55x256xbf16>
    %14 = vector.shape_cast %13 : vector<1x55x256xbf16> to vector<55x256xbf16>
    %cst_16 = arith.constant dense<0.000000e+00> : vector<32x256xf32>
    %15 = tpu.matmul %12, %14, %cst_16 {dimension_numbers = #tpu.dot_dimension_numbers<[1], [0], [0], [1], [0, 0, 1, 1], [], []>} : vector<32x55xbf16>, vector<55x256xbf16>, vector<32x256xf32> -> vector<32x256xf32>
    %16 = arith.addf %10, %15 : vector<32x256xf32>
    %cst_17 = arith.constant 0.000000e+00 : f32
    %17 = vector.broadcast %cst_17 : f32 to vector<32x256xf32>
    %18 = arith.maximumf %16, %17 : vector<32x256xf32>
    %19 = arith.truncf %18 : vector<32x256xf32> to vector<32x256xbf16>
    %c0_18 = arith.constant 0 : index
    %c0_19 = arith.constant 0 : index
    %20 = vector.load %arg2[%c0_18, %c0_19] : memref<8x32xbf16, #tpu.memory_space<vmem>>, vector<8x32xbf16>
    %cst_20 = arith.constant dense<0.000000e+00> : vector<8x256xf32>
    %21 = tpu.matmul %20, %19, %cst_20 {dimension_numbers = #tpu.dot_dimension_numbers<[1], [0], [0], [1], [0, 0, 1, 1], [], []>} : vector<8x32xbf16>, vector<32x256xbf16>, vector<8x256xf32> -> vector<8x256xf32>
    %22 = arith.truncf %21 : vector<8x256xf32> to vector<8x256xbf16>
    %c0_21 = arith.constant 0 : index
    %c0_22 = arith.constant 0 : index
    %23 = vector.load %arg3[%c0_21, %c0_22] : memref<256x128xbf16, #tpu.memory_space<vmem>>, vector<256x128xbf16>
    %cst_23 = arith.constant dense<0.000000e+00> : vector<8x128xf32>
    %24 = tpu.matmul %22, %23, %cst_23 {dimension_numbers = #tpu.dot_dimension_numbers<[1], [0], [0], [1], [0, 0, 1, 1], [], []>} : vector<8x256xbf16>, vector<256x128xbf16>, vector<8x128xf32> -> vector<8x128xf32>
    %c0_24 = arith.constant 0 : index
    %c0_25 = arith.constant 0 : index
    %25 = vector.load %arg4[%c0_24, %c0_25] : memref<1x128xf32, #tpu.memory_space<vmem>>, vector<1x128xf32>
    %26 = vector.broadcast %25 : vector<1x128xf32> to vector<8x128xf32>
    %27 = arith.addf %24, %26 : vector<8x128xf32>
    %c0_26 = arith.constant 0 : index
    %c0_27 = arith.constant 0 : index
    %28 = vector.load %arg5[%c0_26, %c0_27] : memref<8x128xf32, #tpu.memory_space<vmem>>, vector<8x128xf32>
    tpu.vector_store %arg5[%c0_26, %c0_27], %27 {strides = array<i32>} : memref<8x128xf32, #tpu.memory_space<vmem>>, vector<8x128xf32>,
    return
  }
}

</mosaic_0001>

<bundles_post_ra>
// kernel: inference_model_forward.1
= control target key start
LH: loop header
LB: loop body
LE: loop exit
PB: predicated region body
PF: predicated region fallthrough
CT: control target
= control target key end

     0   :  { %vm97_vm0 = vcmask 1042432   ;;  %vm98_vm1 = vcmask 1043456   ;;  %v810_v1 = vmov 65535   ;;  %vm90_vm2 = vcmask 449536   ;;  %s1053_s1 = inlined_call_operand.vmem [shape: bf16[3,55,256], index: 1, kind: input, shape index: {}]   ;;  %s1054_s0 = inlined_call_operand.vmem [shape: bf16[3,32,55], index: 0, kind: input, shape index: {}]   ;;  %s1055_s3 = inlined_call_operand.vmem [shape: bf16[256,128], index: 3, kind: input, shape index: {}]   ;;  %s1056_s2 = inlined_call_operand.vmem [shape: bf16[8,32], index: 2, kind: input, shape index: {}]   ;;  %s1057_s4 = inlined_call_operand.vmem [shape: f32[1,128], index: 4, kind: input, shape index: {}]   ;;  %s1058_s5 = inlined_call_operand.vmem [shape: f32[8,128], index: 5, kind: output, shape index: {}]  }
   0x1   :  { %v574_v0 = vld [vmem:[%s1053_s1 + $0x68] sm:$0xff]  ;;  %v99_v2 = vsel %vm97_vm0, 4294967295, %v810_v1  ;;  %v601_v8 = vld [vmem:[%s1053_s1 + $0x58] sm:$0xf]  ;;  %v775_v9 = vld [vmem:[%s1053_s1 + $0x5c] sm:$0xf0] }
   0x2   :  { %v74_v3 = vunpack.c.l.b16 %v574_v0  ;;  %v75_v4 = vunpack.c.h.b16 %v574_v0  ;;  %v844_v5 = vsel %vm98_vm1, %v99_v2, 0  ;;  %v774_v12 = vld [vmem:[%s1053_s1 + $0x5c] sm:$0xf]  ;;  %v603_v13 = vld [vmem:[%s1053_s1 + $0x60] sm:$0xf0]  ;;  %v31_v14 = vld [vmem:[%s1053_s1 + $0x30] sm:$0xff]  ;;  %v602_v15 = vor.u32 %v775_v9, %v601_v8 }
   0x3   :  { %v606_v16 = vor.u32 %v774_v12, %v603_v13  ;;  %v593_v17 = vld [vmem:[%s1053_s1 + $0x48] sm:$0xf]  ;;  %v773_v18 = vld [vmem:[%s1053_s1 + $0x4c] sm:$0xf0]  ;;  %v772_v19 = vld [vmem:[%s1053_s1 + $0x4c] sm:$0xf]  ;;  %v174_v21 = vunpack.c.l.b16 %v31_v14  ;;  %v175_v22 = vunpack.c.h.b16 %v31_v14 }
   0x4   :  { %v82_v6 = vpack.c.b16 %v74_v3, %v74_v3  ;;  %v83_v7 = vpack.c.b16 %v75_v4, %v75_v4  ;;  %v595_v20 = vld [vmem:[%s1053_s1 + $0x50] sm:$0xf0]  ;;  %v657_v23 = vld [vmem:[%s1053_s1 + $0xa0] sm:$0xff]  ;;  %v594_v24 = vor.u32 %v773_v18, %v593_v17  ;;  %v585_v26 = vld [vmem:[%s1053_s1 + $0x38] sm:$0xf]  ;;  %vm369_vm3 = vcmask 261120  }
   0x5   :  { %v598_v25 = vor.u32 %v772_v19, %v595_v20  ;;  %v771_v27 = vld [vmem:[%s1053_s1 + $0x3c] sm:$0xf0]  ;;  %v282_v28 = vunpack.c.l.b16 %v657_v23  ;;  %v283_v29 = vunpack.c.h.b16 %v657_v23  ;;  %v770_v30 = vld [vmem:[%s1053_s1 + $0x3c] sm:$0xf]  ;;  %v587_v31 = vld [vmem:[%s1053_s1 + $0x40] sm:$0xf0]  ;;  %v182_v32 = vpack.c.b16 %v174_v21, %v174_v21 }
   0x6   :  { %v102_v10 = vand.u32 %v844_v5, %v82_v6  ;;  %v105_v11 = vand.u32 %v844_v5, %v83_v7  ;;  %v183_v33 = vpack.c.b16 %v175_v22, %v175_v22  ;;  %v586_v34 = vor.u32 %v771_v27, %v585_v26  ;;  %v768_v38 = vld [vmem:[%s1054_s0 + $0x10] sm:$0xff]  ;;  %v769_v39 = vld [vmem:[%s1054_s0 + $0x18] sm:$0xff]  ;;  %v637_v42 = vld [vmem:[%s1053_s1 + $0x20] sm:$0xf] }
   0x7   :  { %v590_v35 = vor.u32 %v770_v30, %v587_v31  ;;  %v290_v36 = vpack.c.b16 %v282_v28, %v282_v28  ;;  %v291_v37 = vpack.c.b16 %v283_v29, %v283_v29  ;;  %v197_v40 = vand.u32 %v182_v32, %v844_v5  ;;  %v767_v43 = vld [vmem:[%s1053_s1 + $0x24] sm:$0xf0]  ;;  %v766_v44 = vld [vmem:[%s1053_s1 + $0x24] sm:$0xf]  ;;  %v639_v45 = vld [vmem:[%s1053_s1 + $0x28] sm:$0xf0] }
   0x8   :  { %111 = vmatpush.bf16.msra.mxu0 %v102_v10  ;;  %800 = vmatpush.bf16.msra.mxu2 %v102_v10  ;;  %v200_v41 = vand.u32 %v183_v33, %v844_v5  ;;  %v684_v48 = vld [vmem:[%s1053_s1 + $0x90] sm:$0xf]  ;;  %v783_v49 = vld [vmem:[%s1053_s1 + $0x94] sm:$0xf0]  ;;  %v638_v50 = vor.u32 %v767_v43, %v637_v42  ;;  %v642_v51 = vor.u32 %v766_v44, %v639_v45  ;;  %v782_v52 = vld [vmem:[%s1053_s1 + $0x94] sm:$0xf] }
   0x9   :  { %130 = vmatpush.bf16.msra.mxu1 %v105_v11  ;;  %804 = vmatpush.bf16.msra.mxu3 %v105_v11  ;;  %v305_v46 = vand.u32 %v290_v36, %v844_v5  ;;  %v308_v47 = vand.u32 %v291_v37, %v844_v5  ;;  %v686_v53 = vld [vmem:[%s1053_s1 + $0x98] sm:$0xf0]  ;;  %v629_v54 = vld [vmem:[%s1053_s1 + $0x10] sm:$0xf]  ;;  %v765_v55 = vld [vmem:[%s1053_s1 + $0x14] sm:$0xf0]  ;;  %v685_v58 = vor.u32 %v783_v49, %v684_v48 }
   0xa   :  { %v764_v56 = vld [vmem:[%s1053_s1 + $0x14] sm:$0xf]  ;;  %v631_v57 = vld [vmem:[%s1053_s1 + $0x18] sm:$0xf0]  ;;  %v689_v59 = vor.u32 %v782_v52, %v686_v53  ;;  %v676_v60 = vld [vmem:[%s1053_s1 + $0x80] sm:$0xf]  ;;  %v630_v62 = vor.u32 %v765_v55, %v629_v54 }
   0xb   :  { %v781_v61 = vld [vmem:[%s1053_s1 + $0x84] sm:$0xf0]  ;;  %v634_v63 = vor.u32 %v764_v56, %v631_v57  ;;  %v780_v0 = vld [vmem:[%s1053_s1 + $0x84] sm:$0xf]  ;;  %v678_v1 = vld [vmem:[%s1053_s1 + $0x88] sm:$0xf0] }
   0xc   :  { %112 = vmatpush.bf16.msra.mxu0 %v602_v15  ;;  %801 = vmatpush.bf16.msra.mxu2 %v602_v15  ;;  %v621_v2 = vld [vmem:[%s1053_s1] sm:$0xf]  ;;  %v763_v3 = vld [vmem:[%s1053_s1 + $0x4] sm:$0xf0]  ;;  %v762_v4 = vld [vmem:[%s1053_s1 + $0x4] sm:$0xf]  ;;  %v677_v6 = vor.u32 %v781_v61, %v676_v60  ;;  %v681_v7 = vor.u32 %v780_v0, %v678_v1 }
   0xd   :  { %131 = vmatpush.bf16.msra.mxu1 %v606_v16  ;;  %805 = vmatpush.bf16.msra.mxu3 %v606_v16  ;;  %v623_v5 = vld [vmem:[%s1053_s1 + $0x8] sm:$0xf0]  ;;  %v668_v8 = vld [vmem:[%s1053_s1 + $0x70] sm:$0xf]  ;;  %v622_v9 = vor.u32 %v763_v3, %v621_v2  ;;  %v779_v11 = vld [vmem:[%s1053_s1 + $0x74] sm:$0xf0] }
   0xe   :  { %v626_v10 = vor.u32 %v762_v4, %v623_v5  ;;  %v778_v12 = vld [vmem:[%s1053_s1 + $0x74] sm:$0xf]  ;;  %v670_v13 = vld [vmem:[%s1053_s1 + $0x78] sm:$0xf0]  ;;  %v669_v14 = vor.u32 %v779_v11, %v668_v8  ;;  %v760_v16 = vld [vmem:[%s1054_s0] sm:$0xff] }
   0xf   :  { %v673_v15 = vor.u32 %v778_v12, %v670_v13  ;;  %v776_v17 = vld [vmem:[%s1054_s0 + $0x20] sm:$0xff]  ;;  %v761_v18 = vld [vmem:[%s1054_s0 + $0x8] sm:$0xff]  ;;  %v791_v36 = vld [vmem:[%s1055_s3 + $0x38] sm:$0xff] }
  0x10   :  { %113 = vmatpush.bf16.msra.mxu0 %v594_v24  ;;  %802 = vmatpush.bf16.msra.mxu2 %v594_v24  ;;  %v777_v19 = vld [vmem:[%s1054_s0 + $0x28] sm:$0xff]  ;;  %v799_v37 = vld [vmem:[%s1055_s3 + $0x78] sm:$0xff]  ;;  %v786_v2 = vld [vmem:[%s1055_s3 + $0x10] sm:$0xff] }
  0x11   :  { %132 = vmatpush.bf16.msra.mxu1 %v598_v25  ;;  %806 = vmatpush.bf16.msra.mxu3 %v598_v25  ;;  %v795_v52 = vld [vmem:[%s1055_s3 + $0x58] sm:$0xff]  ;;  %v794_v3 = vld [vmem:[%s1055_s3 + $0x50] sm:$0xff] }
  0x14   :  { %114 = vmatpush.bf16.msra.mxu0 %v586_v34  ;;  %803 = vmatpush.bf16.msra.mxu2 %v586_v34 }
  0x15   :  { %133 = vmatpush.bf16.msra.mxu1 %v590_v35  ;;  %807 = vmatpush.bf16.msra.mxu3 %v590_v35 }
  0x17   :  { %607 = vmatmul.msk.bf16.vlgmr.msra.gmra.mxu0 %vm90_vm2, %v768_v38  ;;  %608 = vmatmul.msk.bf16.vlgmr.msra.gmra.mxu2 %vm90_vm2, %v769_v39 }
  0x18   :  { %206 = vmatpush.bf16.msrb.mxu2 %v197_v40  ;;  %609 = vmatmul.msk.bf16.vlgmr.msra.gmra.mxu1 %vm90_vm2, %v768_v38  ;;  %v790_v38 = vld [vmem:[%s1055_s3 + $0x30] sm:$0xff]  ;;  %v789_v40 = vld [vmem:[%s1055_s3 + $0x28] sm:$0xff] }
  0x19   :  { %225 = vmatpush.bf16.msrb.mxu3 %v200_v41  ;;  %314 = vmatpush.bf16.msrb.mxu0 %v305_v46  ;;  %v797_v41 = vld [vmem:[%s1055_s3 + $0x68] sm:$0xff]  ;;  %v788_v46 = vld [vmem:[%s1055_s3 + $0x20] sm:$0xff] }
  0x1a   :  { %610 = vmatmul.msk.bf16.vlgmr.msra.gmra.mxu3 %vm90_vm2, %v769_v39  ;;  %333 = vmatpush.bf16.msrb.mxu1 %v308_v47  ;;  %v798_v39 = vld [vmem:[%s1055_s3 + $0x70] sm:$0xff]  ;;  %v796_v47 = vld [vmem:[%s1055_s3 + $0x60] sm:$0xff] }
  0x1c   :  { %207 = vmatpush.bf16.msrb.mxu2 %v638_v50 }
  0x1d   :  { %226 = vmatpush.bf16.msrb.mxu3 %v642_v51  ;;  %315 = vmatpush.bf16.msrb.mxu0 %v685_v58  ;;  %v787_v51 = vld [vmem:[%s1055_s3 + $0x18] sm:$0xff] }
  0x1e   :  { %334 = vmatpush.bf16.msrb.mxu1 %v689_v59 }
  0x20   :  { %208 = vmatpush.bf16.msrb.mxu2 %v630_v62 }
  0x21   :  { %227 = vmatpush.bf16.msrb.mxu3 %v634_v63  ;;  %316 = vmatpush.bf16.msrb.mxu0 %v677_v6 }
  0x22   :  { %335 = vmatpush.bf16.msrb.mxu1 %v681_v7 }
  0x24   :  { %209 = vmatpush.bf16.msrb.mxu2 %v622_v9 }
  0x25   :  { %228 = vmatpush.bf16.msrb.mxu3 %v626_v10  ;;  %317 = vmatpush.bf16.msrb.mxu0 %v669_v14  ;;  %v785_v14 = vld [vmem:[%s1055_s3 + $0x8] sm:$0xff] }
  0x26   :  { %336 = vmatpush.bf16.msrb.mxu1 %v673_v15  ;;  %v793_v15 = vld [vmem:[%s1055_s3 + $0x48] sm:$0xff] }
  0x27   :  { %643 = vmatmul.msk.bf16.vlgmr.msrb.gmra.mxu2 %vm90_vm2, %v760_v16 }
  0x28   :  { %690 = vmatmul.msk.bf16.vlgmr.msrb.gmra.mxu0 %vm90_vm2, %v776_v17 }
  0x29   :  { %692 = vmatmul.msk.bf16.vlgmr.msrb.gmra.mxu1 %vm90_vm2, %v776_v17  ;;  %533 = vmatpush.bf16.msra.mxu0 %v791_v36 }
  0x2a   :  { %645 = vmatmul.msk.bf16.vlgmr.msrb.gmra.mxu3 %vm90_vm2, %v760_v16  ;;  %546 = vmatpush.bf16.msra.mxu1 %v799_v37 }
  0x2d   :  { %534 = vmatpush.bf16.msra.mxu0 %v790_v38 }
  0x2e   :  { %547 = vmatpush.bf16.msra.mxu1 %v798_v39 }
  0x31   :  { %535 = vmatpush.bf16.msra.mxu0 %v789_v40 }
  0x32   :  { %548 = vmatpush.bf16.msra.mxu1 %v797_v41 }
  0x35   :  { %536 = vmatpush.bf16.msra.mxu0 %v788_v46 }
  0x36   :  { %549 = vmatpush.bf16.msra.mxu1 %v796_v47 }
  0x37   :  { %644 = vmatmul.msk.bf16.gmra.mxu2 %vm90_vm2, %v761_v18 }
  0x38   :  { %691 = vmatmul.msk.bf16.gmra.mxu0 %vm90_vm2, %v777_v19 }
  0x39   :  { %693 = vmatmul.msk.bf16.gmra.mxu1 %vm90_vm2, %v777_v19  ;;  %537 = vmatpush.bf16.msra.mxu0 %v787_v51 }
  0x3a   :  { %646 = vmatmul.msk.bf16.gmra.mxu3 %vm90_vm2, %v761_v18  ;;  %550 = vmatpush.bf16.msra.mxu1 %v795_v52 }
  0x3d   :  { %538 = vmatpush.bf16.msra.mxu0 %v786_v2 }
  0x3e   :  { %551 = vmatpush.bf16.msra.mxu1 %v794_v3 }
  0x41   :  { %539 = vmatpush.bf16.msra.mxu0 %v785_v14 }
  0x42   :  { %552 = vmatpush.bf16.msra.mxu1 %v793_v15 }
  0x94   :  { %v116_v20 = vpop.f32.mrf.mxu0 }
  0x95   :  { %v135_v21 = vpop.f32.mrf.mxu1 }
  0x9a   :  { %v121_v22 = vpop.f32.mrf.mxu2 }
  0x9c   :  { %v118_v24 = vpop.f32.mrf.mxu0 }
  0x9d   :  { %v140_v23 = vpop.f32.mrf.mxu3  ;;  %v137_v25 = vpop.f32.mrf.mxu1 }
  0xa2   :  { %v123_v26 = vpop.f32.mrf.mxu2 }
  0xa5   :  { %v142_v27 = vpop.f32.mrf.mxu3  ;;  %v319_v28 = vpop.f32.mrf.mxu0 }
  0xa6   :  { %v338_v29 = vpop.f32.mrf.mxu1 }
  0xaa   :  { %v211_v30 = vpop.f32.mrf.mxu2 }
  0xab   :  { %v212_v55 = vadd.f32 %v211_v30, %v116_v20 }
  0xad   :  { %v230_v31 = vpop.f32.mrf.mxu3  ;;  %v321_v32 = vpop.f32.mrf.mxu0  ;;  %v348_v6 = vadd.f32 %v319_v28, %v212_v55 }
  0xae   :  { %v340_v33 = vpop.f32.mrf.mxu1  ;;  %v231_v59 = vadd.f32 %v230_v31, %v135_v21  ;;  %v809_v31 = vld [vmem:[%s1057_s4] ss:$0 sm:$0xff] }
  0xaf   :  { %v356_v18 = vmax.f32 %v348_v6, 0.0 }
  0xb0   :  { %v349_v9 = vadd.f32 %v338_v29, %v231_v59 }
  0xb2   :  { %v213_v34 = vpop.f32.mrf.mxu2  ;;  %v357_v19 = vmax.f32 %v349_v9, 0.0 }
  0xb3   :  { %v214_v50 = vadd.f32 %v213_v34, %v118_v24  ;;  %v792_v24 = vld [vmem:[%s1055_s3 + $0x40] sm:$0xff] }
  0xb4   :  { %553 = vmatpush.bf16.msra.mxu1 %v792_v24 }
  0xb5   :  { %v232_v35 = vpop.f32.mrf.mxu3  ;;  %v324_v42 = vpop.f32.mrf.mxu0  ;;  %v350_v63 = vadd.f32 %v321_v32, %v214_v50 }
  0xb6   :  { %v343_v44 = vpop.f32.mrf.mxu1  ;;  %v233_v53 = vadd.f32 %v232_v35, %v137_v25 }
  0xb7   :  { %v358_v12 = vmax.f32 %v350_v63, 0.0 }
  0xb8   :  { %v351_v4 = vadd.f32 %v340_v33, %v233_v53 }
  0xb9   :  { %v364_v20 = vpack.c.bf16 %v358_v12, %v356_v18 }
  0xba   :  { %v216_v43 = vpop.f32.mrf.mxu2  ;;  %v359_v16 = vmax.f32 %v351_v4, 0.0 }
  0xbb   :  { %v217_v48 = vadd.f32 %v216_v43, %v121_v22  ;;  %v368_v22 = vld [vmem:[%s1056_s2] sm:$0xf] }
  0xbc   :  { %v365_v21 = vpack.c.bf16 %v359_v16, %v357_v19 }
  0xbd   :  { %v235_v45 = vpop.f32.mrf.mxu3  ;;  %v352_v56 = vadd.f32 %v324_v42, %v217_v48  ;;  %v326_v61 = vpop.f32.mrf.mxu0 }
  0xbe   :  { %v236_v49 = vadd.f32 %v235_v45, %v140_v23  ;;  %v345_v0 = vpop.f32.mrf.mxu1  ;;  %v784_v23 = vld [vmem:[%s1055_s3] sm:$0xff] }
  0xbf   :  { %v360_v7 = vmax.f32 %v352_v56, 0.0  ;;  %540 = vmatpush.bf16.msra.mxu0 %v784_v23 }
  0xc0   :  { %v353_v60 = vadd.f32 %v343_v44, %v236_v49 }
  0xc2   :  { %v218_v54 = vpop.f32.mrf.mxu2  ;;  %v361_v10 = vmax.f32 %v353_v60, 0.0 }
  0xc3   :  { %v219_v57 = vadd.f32 %v218_v54, %v123_v26 }
  0xc5   :  { %v237_v58 = vpop.f32.mrf.mxu3  ;;  %v354_v1 = vadd.f32 %v326_v61, %v219_v57 }
  0xc6   :  { %v238_v62 = vadd.f32 %v237_v58, %v142_v27 }
  0xc7   :  { %v362_v8 = vmax.f32 %v354_v1, 0.0 }
  0xc8   :  { %v355_v5 = vadd.f32 %v345_v0, %v238_v62 }
  0xc9   :  { %v366_v13 = vpack.c.bf16 %v362_v8, %v360_v7 }
  0xca   :  { %v363_v11 = vmax.f32 %v355_v5, 0.0 }
  0xcb   :  { %379 = vmatpush.bf16.msra.mxu2 %v366_v13 }
  0xcc   :  { %v367_v17 = vpack.c.bf16 %v363_v11, %v361_v10 }
  0xce   :  { %392 = vmatpush.bf16.msra.mxu3 %v367_v17 }
  0xcf   :  { %380 = vmatpush.bf16.msra.mxu2 %v364_v20 }
  0xd2   :  { %393 = vmatpush.bf16.msra.mxu3 %v365_v21  ;;  %694 = vmatmul.msk.bf16.vlgmr.msra.gmra.mxu2 %vm369_vm3, %v368_v22 }
  0xd5   :  { %695 = vmatmul.msk.bf16.vlgmr.msra.gmra.mxu3 %vm369_vm3, %v368_v22 }
 0x155   :  { %v382_v25 = vpop.f32.mrf.mxu2 }
 0x156   :  { %v399_v26 = vpack.c.bf16 %v382_v25, %v382_v25 }
 0x158   :  { %v395_v27 = vpop.f32.mrf.mxu3  ;;  %541 = vmatmul.bf16.vlgmr.msra.gmra.mxu0 %v399_v26 }
 0x159   :  { %v400_v28 = vpack.c.bf16 %v395_v27, %v395_v27 }
 0x15b   :  { %554 = vmatmul.bf16.vlgmr.msra.gmra.mxu1 %v400_v28 }
 0x15d   :  { %v384_v29 = vpop.f32.mrf.mxu2 }
 0x160   :  { %v397_v30 = vpop.f32.mrf.mxu3 }
 0x1d5   :  { %v542_v32 = vpop.f32.mrf.mxu0 }
 0x1d6   :  { %v543_v33 = vadd.f32 %v809_v31, %v542_v32 }
 0x1d8   :  { %v555_v34 = vpop.f32.mrf.mxu1 }
 0x1d9   :  { %v556_v35 = vadd.f32 %v555_v34, %v543_v33 }
 0x1db   :  { %559 = vst [vmem:[%s1058_s5] sm:$0xff] %v556_v35 }
 0x1dd   :  { %v544_v36 = vpop.f32.mrf.mxu0 }
 0x1e0   :  { %v557_v37 = vpop.f32.mrf.mxu1 }

</bundles_post_ra>
